<compile_context>
chip_gen: v5e
topology: v5e:2x2
jax: 0.10.0
libtpu: 0.0.40
codegen_flags: <defaults>
</compile_context>

<pallas_src>
import math
import jax
import jax.numpy as jnp
from jax.experimental import pallas as pl
from jax.experimental.pallas import tpu as pltpu


# Default (largest) tile sizes; clipped per-problem below.
DEF_TM_F32, DEF_TN_F32, DEF_TK_F32 = 512, 512, 512     # f32 operands
DEF_TM_LP, DEF_TN_LP, DEF_TK_LP = 512, 1024, 512       # bf16 ("low precision") operands


def _round_up(v, m):
    return (v + m - 1) // m * m


def _vmem_capacity_bytes():
    """Per-TensorCore VMEM capacity; conservative fallback (v7x) if query fails."""
    try:
        return int(pltpu.get_tpu_info().vmem_capacity_bytes)
    except Exception:
        return 64 * 1024 * 1024


def _footprint_bytes(tm, tn, tk, in_itemsize, out_itemsize):
    """Double-buffered VMEM working set of one grid step."""
    acc = 0 if out_itemsize >= 4 else tm * tn * 4           # scratch only for narrow out
    return (2 * (tm * tk + tk * tn) * in_itemsize            # x & w blocks (2-deep)
            + 2 * tm * tn * out_itemsize                      # out block (2-deep)
            + 2 * tn * 4                                      # bias block
            + acc)


# ---------------------------------------------------------------------------
# Kernels: one (TM, TN) output tile, reducing over the K grid axis (last axis).
# ---------------------------------------------------------------------------
def _matmul_bias_f32_kernel(x_ref, w_ref, b_ref, o_ref):
    # f32 output: accumulate directly into the output block (its block index ignores
    # k, so it stays resident in VMEM across the K axis). Bias seeds the accumulator.
    k = pl.program_id(2)

    @pl.when(k == 0)
    def _():
        o_ref[...] = jnp.broadcast_to(b_ref[...], o_ref.shape).astype(o_ref.dtype)

    o_ref[...] += jnp.dot(x_ref[...], w_ref[...], preferred_element_type=jnp.float32)


def _matmul_bias_acc_kernel(x_ref, w_ref, b_ref, o_ref, acc_ref):
    # Narrow (e.g. bf16) output: f32 scratch accumulator, cast once in the finalize.
    k = pl.program_id(2)

    @pl.when(k == 0)
    def _():
        acc_ref[...] = jnp.zeros_like(acc_ref)

    acc_ref[...] += jnp.dot(x_ref[...], w_ref[...], preferred_element_type=jnp.float32)

    @pl.when(k == pl.num_programs(2) - 1)
    def _():
        o_ref[...] = (acc_ref[...] + b_ref[...]).astype(o_ref.dtype)


def _fused_linear_pallas(x, w, b, out_dtype, tm, tn, tk):
    """x: (M, K), w: (K, N), b: (1, N) f32 -> (M, N). All dims tile-aligned."""
    M, K = x.shape
    _, N = w.shape
    grid = (M // tm, N // tn, K // tk)

    out_dtype = jnp.dtype(out_dtype)
    in_itemsize = x.dtype.itemsize
    direct_acc = out_dtype == jnp.dtype(jnp.float32)
    kernel = _matmul_bias_f32_kernel if direct_acc else _matmul_bias_acc_kernel
    scratch = [] if direct_acc else [pltpu.VMEM((tm, tn), jnp.float32)]

    vmem_cap = _vmem_capacity_bytes()
    footprint = _footprint_bytes(tm, tn, tk, in_itemsize, out_dtype.itemsize)
    # Derive the scoped-VMEM limit from the tiles; cap below physical per generation.
    vmem_limit = int(min(0.75 * vmem_cap, max(footprint + (8 << 20), 32 << 20)))

    cost = pl.CostEstimate(
        flops=2 * M * N * K,
        transcendentals=0,
        bytes_accessed=(M * K * in_itemsize + K * N * w.dtype.itemsize
                        + M * N * out_dtype.itemsize + N * 4),
    )

    return pl.pallas_call(
        kernel,
        out_shape=jax.ShapeDtypeStruct((M, N), out_dtype),
        grid_spec=pltpu.PrefetchScalarGridSpec(
            num_scalar_prefetch=0,
            grid=grid,
            in_specs=[
                pl.BlockSpec((tm, tk), lambda i, j, k: (i, k)),
                pl.BlockSpec((tk, tn), lambda i, j, k: (k, j)),
                pl.BlockSpec((1, tn), lambda i, j, k: (0, j)),
            ],
            out_specs=pl.BlockSpec((tm, tn), lambda i, j, k: (i, j)),
            scratch_shapes=scratch,
        ),
        compiler_params=pltpu.CompilerParams(
            dimension_semantics=("parallel", "parallel", "arbitrary"),
            vmem_limit_bytes=vmem_limit,
        ),
        cost_estimate=cost,
    )(x, w, b)


# ---------------------------------------------------------------------------
# Parameter prep: one-time transpose + partition fusion + lane padding.
# ---------------------------------------------------------------------------
def prepare_params(w1, b1, w2, b2, *, compute_dtype=None, tn=None, tk=None):
    """Fuse the two nn.Linear partitions into a single (K, N) weight slab + bias.

    w1: (N1, K), w2: (N2, K) (PyTorch nn.Linear convention), biases (N1,), (N2,).
    Done once at init time -> zero runtime transpose / concat / pad cost.
    """
    K = w1.shape[1]
    assert w2.shape[1] == K
    N = w1.shape[0] + w2.shape[0]

    w = jnp.concatenate([w1, w2], axis=0).T                 # (K, N), one-time
    if b1 is None:
        b1 = jnp.zeros((w1.shape[0],), jnp.float32)
    if b2 is None:
        b2 = jnp.zeros((w2.shape[0],), jnp.float32)
    b = jnp.concatenate([b1, b2], axis=0)                   # (N,)

    itemsize = 4 if compute_dtype is None else jnp.dtype(compute_dtype).itemsize
    def_tn = DEF_TN_F32 if itemsize >= 4 else DEF_TN_LP
    def_tk = DEF_TK_F32 if itemsize >= 4 else DEF_TK_LP
    if tn is None:
        tn_base = 256 if N > 128 else 128                   # 256-wide MXU on v6e/v7x
        tn = min(def_tn, _round_up(N, tn_base))
    if tk is None:
        tk = min(def_tk, _round_up(K, 128))

    N_pad = _round_up(N, tn)
    # Megacore: keep >=2 output tiles along the (parallel) N axis when possible so
    # small-batch shapes still split across both v7x TensorCores.
    while N_pad // tn < 2 and tn % 256 == 0:
        tn //= 2
        N_pad = _round_up(N, tn)
    K_pad = _round_up(K, tk)

    if compute_dtype is not None:
        w = w.astype(compute_dtype)
    if (K_pad - K) or (N_pad - N):
        w = jnp.pad(w, ((0, K_pad - K), (0, N_pad - N)))
    b = b.astype(jnp.float32)
    if N_pad - N:
        b = jnp.pad(b, (0, N_pad - N))
    b = b.reshape(1, N_pad)

    # TODO(synk): optional fp8 (float8_e4m3fn) weight path for v7x (bf16+fp8 MXU),
    # keeping f32 accumulation — skipped here for v5e/v6e portability.
    return {"w": w, "b": b, "K": K, "N": N, "tk": tk, "tn": tn,
            "compute_dtype": compute_dtype}


def partitioned_linear(x, params, *, tm=None, out_dtype=None):
    """Mirrors PartitionedLinear.forward: concat(x@W1^T+b1, x@W2^T+b2, -1),
    computed as one fused matmul against the pre-concatenated weight slab."""
    lead = x.shape[:-1]
    K, N = params["K"], params["N"]
    tk, tn = params["tk"], params["tn"]
    w, b = params["w"], params["b"]
    compute_dtype = params["compute_dtype"]
    K_pad = w.shape[0]

    x2d = x.reshape(-1, K)
    M = x2d.shape[0]

    itemsize = 4 if compute_dtype is None else jnp.dtype(compute_dtype).itemsize
    m_base = {4: 8, 2: 16, 1: 32}.get(itemsize, 8)          # sublane packing per dtype
    if tm is None:
        tm = DEF_TM_F32 if itemsize >= 4 else DEF_TM_LP
    tm = min(tm, _round_up(M, m_base))                       # limit M-padding waste
    M_pad = _round_up(M, tm)

    if out_dtype is None:
        out_dtype = compute_dtype if compute_dtype is not None else x.dtype

    if compute_dtype is not None and x2d.dtype != jnp.dtype(compute_dtype):
        x2d = x2d.astype(compute_dtype)
    pad_m, pad_k = M_pad - M, K_pad - K
    if pad_m or pad_k:
        # K zero-padding is required for reduction correctness; M only to tile grain.
        x2d = jnp.pad(x2d, ((0, pad_m), (0, pad_k)))

    out = _fused_linear_pallas(x2d, w, b, out_dtype, tm, tn, tk)
    out = out[:M, :N]
    return out.reshape(*lead, N)


# ---------------------------------------------------------------------------
# Init matching nn.Linear's kaiming_uniform_(a=sqrt(5)) scheme (per partition).
# ---------------------------------------------------------------------------
def init_params(key, in_features, out_features):
    n1 = out_features // 2
    n2 = out_features - n1
    k_w1, k_w2, k_b1, k_b2 = jax.random.split(key, 4)
    bound = 1.0 / math.sqrt(in_features)
    w1 = jax.random.uniform(k_w1, (n1, in_features), jnp.float32, -bound, bound)
    w2 = jax.random.uniform(k_w2, (n2, in_features), jnp.float32, -bound, bound)
    b1 = jax.random.uniform(k_b1, (n1,), jnp.float32, -bound, bound)
    b2 = jax.random.uniform(k_b2, (n2,), jnp.float32, -bound, bound)
    return w1, b1, w2, b2


if __name__ == "__main__":
    key = jax.random.PRNGKey(0)
    k_x, k_p = jax.random.split(key)

    batch, seq, in_features, out_features = 2, 8, 32, 24
    x = jax.random.normal(k_x, (batch, seq, in_features), jnp.float32)
    w1, b1, w2, b2 = init_params(k_p, in_features, out_features)

    ref = jnp.concatenate([x @ w1.T + b1, x @ w2.T + b2], axis=-1)

    # f32 path (exact check; accumulates directly into the output block).
    params = prepare_params(w1, b1, w2, b2)
    out = jax.block_until_ready(partitioned_linear(x, params))
    assert out.shape == (batch, seq, out_features)
    assert out.dtype == jnp.float32
    assert jnp.allclose(out, ref, atol=1e-5, rtol=1e-5)

    # bf16-operand / f32-accumulate path (bf16 writeback by default).
    params_bf16 = prepare_params(w1, b1, w2, b2, compute_dtype=jnp.bfloat16)
    out_bf16 = jax.block_until_ready(partitioned_linear(x, params_bf16))
    assert out_bf16.shape == (batch, seq, out_features)
    assert jnp.allclose(out_bf16.astype(jnp.float32), ref, atol=2e-2, rtol=2e-2)

    print("KERNEL_OK")
</pallas_src>

<mosaic_0001>
module attributes {stable_mosaic.version = 11 : i64} {
  func.func @_matmul_bias_f32_kernel(%arg0: i32, %arg1: i32, %arg2: i32, %arg3: memref<16x128xf32, #tpu.memory_space<vmem>>, %arg4: memref<128x128xf32, #tpu.memory_space<vmem>>, %arg5: memref<1x128xf32, #tpu.memory_space<vmem>>, %arg6: memref<16x128xf32, #tpu.memory_space<vmem>>) attributes {dimension_semantics = [#tpu.dimension_semantics<parallel>, #tpu.dimension_semantics<parallel>, #tpu.dimension_semantics<arbitrary>], iteration_bounds = array<i64: 1, 1, 1>, scalar_prefetch = 0 : i64, scratch_operands = 0 : i64, tpu.core_type = #tpu.core_type<tc>, window_params = [{transform_indices = @transform_0, window_bounds = array<i64: 16, 128>}, {transform_indices = @transform_1, window_bounds = array<i64: 128, 128>}, {transform_indices = @transform_2, window_bounds = array<i64: 1, 128>}, {transform_indices = @transform_3, window_bounds = array<i64: 16, 128>}]} {
    %c0_i32 = arith.constant 0 : i32
    %0 = arith.cmpi eq, %arg2, %c0_i32 : i32
    %1 = arith.extui %0 : i1 to i32
    %c0_i32_0 = arith.constant 0 : i32
    %2 = arith.cmpi ne, %1, %c0_i32_0 : i32
    scf.if %2 {
      %c0_8 = arith.constant 0 : index
      %c0_9 = arith.constant 0 : index
      %9 = vector.load %arg5[%c0_8, %c0_9] : memref<1x128xf32, #tpu.memory_space<vmem>>, vector<1x128xf32>
      %10 = vector.shape_cast %9 : vector<1x128xf32> to vector<1x128xf32>
      %11 = vector.broadcast %10 : vector<1x128xf32> to vector<16x128xf32>
      %c0_10 = arith.constant 0 : index
      %c0_11 = arith.constant 0 : index
      %12 = vector.load %arg6[%c0_10, %c0_11] : memref<16x128xf32, #tpu.memory_space<vmem>>, vector<16x128xf32>
      tpu.vector_store %arg6[%c0_10, %c0_11], %11 {strides = array<i32>} : memref<16x128xf32, #tpu.memory_space<vmem>>, vector<16x128xf32>,
    } else {
    }
    %c0 = arith.constant 0 : index
    %c0_1 = arith.constant 0 : index
    %3 = vector.load %arg6[%c0, %c0_1] : memref<16x128xf32, #tpu.memory_space<vmem>>, vector<16x128xf32>
    %c0_2 = arith.constant 0 : index
    %c0_3 = arith.constant 0 : index
    %4 = vector.load %arg3[%c0_2, %c0_3] : memref<16x128xf32, #tpu.memory_space<vmem>>, vector<16x128xf32>
    %c0_4 = arith.constant 0 : index
    %c0_5 = arith.constant 0 : index
    %5 = vector.load %arg4[%c0_4, %c0_5] : memref<128x128xf32, #tpu.memory_space<vmem>>, vector<128x128xf32>
    %cst = arith.constant dense<0.000000e+00> : vector<16x128xf32>
    %6 = tpu.matmul %4, %5, %cst {dimension_numbers = #tpu.dot_dimension_numbers<[1], [0], [0], [1], [0, 0, 1, 1], [], []>} : vector<16x128xf32>, vector<128x128xf32>, vector<16x128xf32> -> vector<16x128xf32>
    %7 = arith.addf %3, %6 : vector<16x128xf32>
    %c0_6 = arith.constant 0 : index
    %c0_7 = arith.constant 0 : index
    %8 = vector.load %arg6[%c0_6, %c0_7] : memref<16x128xf32, #tpu.memory_space<vmem>>, vector<16x128xf32>
    tpu.vector_store %arg6[%c0_6, %c0_7], %7 {strides = array<i32>} : memref<16x128xf32, #tpu.memory_space<vmem>>, vector<16x128xf32>,
    return
  }
  func.func @transform_0(%arg0: i32, %arg1: i32, %arg2: i32) -> (i32, i32) {
    %c0_i32 = arith.constant 0 : i32
    return %arg0, %arg2 : i32, i32
  }
  func.func @transform_1(%arg0: i32, %arg1: i32, %arg2: i32) -> (i32, i32) {
    %c0_i32 = arith.constant 0 : i32
    return %arg2, %arg1 : i32, i32
  }
  func.func @transform_2(%arg0: i32, %arg1: i32, %arg2: i32) -> (i32, i32) {
    %c0_i32 = arith.constant 0 : i32
    %c0_i32_0 = arith.constant 0 : i32
    return %c0_i32, %arg1 : i32, i32
  }
  func.func @transform_3(%arg0: i32, %arg1: i32, %arg2: i32) -> (i32, i32) {
    %c0_i32 = arith.constant 0 : i32
    return %arg0, %arg1 : i32, i32
  }
}

</mosaic_0001>

<bundles_post_ra>
// kernel: tpu_custom_call.1
= control target key start
LH: loop header
LB: loop body
LE: loop exit
PB: predicated region body
PF: predicated region fallthrough
CT: control target
= control target key end

     0   :  { %8 = vsyncpa [#allocation3], 0  ;;  %s270_s0 = inlined_call_operand.hbm [shape: f32[16,128], index: 0, kind: input, shape index: {}]   ;;  %s271_s1 = inlined_call_operand.hbm [shape: f32[128,128], index: 1, kind: input, shape index: {}]   ;;  %s272_s2 = inlined_call_operand.vmem [shape: f32[1,128], index: 2, kind: input, shape index: {}]   ;;  %s273_s3 = inlined_call_operand.hbm [shape: f32[16,128], index: 3, kind: output, shape index: {}]  }
   0x1   :  { %9 = vsyncpa [#allocation6], 0 }
   0x2   :  { %10 = vsyncpa [#allocation4], 0  ;;  %s15_s14 = sshll.u32 %s270_s0, 4  ;;  %s224_s15 = smov [#allocation2]   ;;  %s16_s14 = int_to_ptr.hbm [resolvable:$true] %s15_s14 }
   0x3   :  { %s17_s16 = sshll.u32 %s224_s15, 4  ;;  %s28_s19 = sshll.u32 %s271_s1, 4  ;;  %s18_s16 = int_to_ptr.vmem [resolvable:$true] %s17_s16  ;;  %s29_s19 = int_to_ptr.hbm [resolvable:$true] %s28_s19 }
   0x4   :  { %s225_s20 = smov 128   ;;  %s226_s21 = smov 8  }
   0x5   :  { %23 = dma.hbm_to_vmem [thread:$0]  %s16_s14, 256, %s18_s16, [#allocation3], %s225_s20, %s225_s20, %s226_s21  }
   0x6   :  { %s227_s22 = smov [#allocation5]  }
   0x7   :  { %s30_s23 = sshll.u32 %s227_s22, 4  ;;  %s31_s23 = int_to_ptr.vmem [resolvable:$true] %s30_s23 }
   0x8   :  { %36 = dma.hbm_to_vmem [thread:$0]  %s29_s19, 2048, %s31_s23, [#allocation6], %s225_s20, %s225_s20, %s226_s21  }
   0x9   :  { %218 = dma.done.wait [#allocation3], 256  }
   0xa   :  { %219 = vsyncadd [#allocation3], 4294967040 }
   0xb   :  { %220 = dma.done.wait [#allocation6], 2048  }
   0xc   :  { %221 = vsyncadd [#allocation6], 4294965248  ;;  %v76_v0 = vld [vmem:[#allocation5 + $0x78] sm:$0xff]  ;;  %v75_v1 = vld [vmem:[#allocation5 + $0x70] sm:$0xff]  ;;  %s228_s24 = smov [#allocation7]   ;;  %s110_s28 = sshll.u32 %s273_s3, 4  ;;  %s111_s28 = int_to_ptr.hbm [resolvable:$true] %s110_s28 }
   0xd   :  { %77 = vmatpush.msra.mxu0 %v76_v0  ;;  %124 = vmatpush.msra.mxu1 %v76_v0  ;;  %v74_v2 = vld [vmem:[#allocation5 + $0x68] sm:$0xff]  ;;  %v73_v3 = vld [vmem:[#allocation5 + $0x60] sm:$0xff]  ;;  %v72_v4 = vld [vmem:[#allocation5 + $0x58] sm:$0xff]  ;;  %s108_s25 = sshll.u32 %s228_s24, 4  ;;  %s109_s25 = int_to_ptr.vmem [resolvable:$true] %s108_s25 }
   0xe   :  { %v71_v5 = vld [vmem:[#allocation5 + $0x50] sm:$0xff]  ;;  %v70_v6 = vld [vmem:[#allocation5 + $0x48] sm:$0xff]  ;;  %v69_v7 = vld [vmem:[#allocation5 + $0x40] sm:$0xff] }
   0xf   :  { %78 = vmatpush.msra.mxu0 %v75_v1  ;;  %125 = vmatpush.msra.mxu1 %v75_v1  ;;  %v68_v8 = vld [vmem:[#allocation5 + $0x38] sm:$0xff]  ;;  %v67_v9 = vld [vmem:[#allocation5 + $0x30] sm:$0xff]  ;;  %v66_v10 = vld [vmem:[#allocation5 + $0x28] sm:$0xff] }
  0x10   :  { %v65_v11 = vld [vmem:[#allocation5 + $0x20] sm:$0xff]  ;;  %v64_v12 = vld [vmem:[#allocation5 + $0x18] sm:$0xff]  ;;  %v63_v13 = vld [vmem:[#allocation5 + $0x10] sm:$0xff] }
  0x11   :  { %79 = vmatpush.msra.mxu0 %v74_v2  ;;  %126 = vmatpush.msra.mxu1 %v74_v2  ;;  %v62_v14 = vld [vmem:[#allocation5 + $0x8] sm:$0xff]  ;;  %v61_v15 = vld [vmem:[#allocation5] sm:$0xff]  ;;  %v59_v16 = vld [vmem:[#allocation2] sm:$0xff] }
  0x12   :  { %v60_v17 = vld [vmem:[#allocation2 + $0x8] sm:$0xff]  ;;  %v145_v18 = vld [vmem:[%s272_s2] ss:$0 sm:$0xff] }
  0x13   :  { %80 = vmatpush.msra.mxu0 %v73_v3  ;;  %127 = vmatpush.msra.mxu1 %v73_v3 }
  0x15   :  { %81 = vmatpush.msra.mxu0 %v72_v4  ;;  %128 = vmatpush.msra.mxu1 %v72_v4 }
  0x17   :  { %82 = vmatpush.msra.mxu0 %v71_v5  ;;  %129 = vmatpush.msra.mxu1 %v71_v5 }
  0x19   :  { %83 = vmatpush.msra.mxu0 %v70_v6  ;;  %130 = vmatpush.msra.mxu1 %v70_v6 }
  0x1b   :  { %84 = vmatpush.msra.mxu0 %v69_v7  ;;  %131 = vmatpush.msra.mxu1 %v69_v7 }
  0x1d   :  { %85 = vmatpush.msra.mxu0 %v68_v8  ;;  %132 = vmatpush.msra.mxu1 %v68_v8 }
  0x1f   :  { %86 = vmatpush.msra.mxu0 %v67_v9  ;;  %133 = vmatpush.msra.mxu1 %v67_v9 }
  0x21   :  { %87 = vmatpush.msra.mxu0 %v66_v10  ;;  %134 = vmatpush.msra.mxu1 %v66_v10 }
  0x23   :  { %88 = vmatpush.msra.mxu0 %v65_v11  ;;  %135 = vmatpush.msra.mxu1 %v65_v11 }
  0x25   :  { %89 = vmatpush.msra.mxu0 %v64_v12  ;;  %136 = vmatpush.msra.mxu1 %v64_v12 }
  0x27   :  { %90 = vmatpush.msra.mxu0 %v63_v13  ;;  %137 = vmatpush.msra.mxu1 %v63_v13 }
  0x29   :  { %91 = vmatpush.msra.mxu0 %v62_v14  ;;  %138 = vmatpush.msra.mxu1 %v62_v14 }
  0x2b   :  { %92 = vmatpush.msra.mxu0 %v61_v15  ;;  %139 = vmatpush.msra.mxu1 %v61_v15 }
  0x2c   :  { %93 = vmatmul.f32.vlgmr.msra.gmra.mxu0 %v59_v16  ;;  %96 = vmatmul.f32.vlgmr.msra.gmra.mxu1 %v60_v17 }
  0xa9   :  { %v94_v19 = vpop.f32.mrf.mxu0  ;;  %v97_v20 = vpop.f32.mrf.mxu1 }
  0xaa   :  { %v100_v21 = vadd.f32 %v145_v18, %v94_v19  ;;  %v101_v22 = vadd.f32 %v145_v18, %v97_v20 }
  0xac   :  { %102 = vst [vmem:[#allocation7] sm:$0xff] %v100_v21 }
  0xad   :  { %103 = vst [vmem:[#allocation7 + $0x8] sm:$0xff] %v101_v22 }
  0xae   :  { %116 = dma.vmem_to_hbm [thread:$0]  %s109_s25, 256, %s111_s28, [#allocation4], %s225_s20, %s225_s20, %s226_s21  }
  0xaf   :  { %222 = dma.done.wait [#allocation4], 256  }
  0xb0   :  { %223 = vsyncadd [#allocation4], 4294967040 }
  0xb1   :  { %121 = vsyncpa [#allocation3], 1 }
  0xb2   :  { %122 = vsyncpa [#allocation6], 1 }
  0xb3   :  { %123 = vsyncpa [#allocation4], 1 }

</bundles_post_ra>
